<compile_context>
chip_gen: v6e
topology: v6e:2x2x1
jax: 0.10.0
libtpu: 0.0.40
codegen_flags: <defaults>
</compile_context>

<pallas_src>
import jax
import jax.numpy as jnp
from jax.experimental import pallas as pl
from jax.experimental.pallas import tpu as pltpu


def _round_up(a, m):
    return (a + m - 1) // m * m


def _causal_conv_kernel(halo_ref, x_ref, w_ref, o_ref):
    # halo_ref: (K-1, C_in)        rows immediately preceding this tile (zeros for tile 0)
    # x_ref   : (TL,  C_in)        this tile's input rows
    # w_ref   : (K*C_in, C_out_pad) bf16 im2col weight
    # o_ref   : (TL,  C_out_pad)   lane-dense output tile
    TL = x_ref.shape[0]
    K = halo_ref.shape[0] + 1

    # Full causal window for this tile, cast to bf16 for the MXU.
    x_full = jnp.concatenate(
        [halo_ref[...].astype(jnp.bfloat16), x_ref[...].astype(jnp.bfloat16)],
        axis=0)                                             # (TL + K - 1, C_in)

    # im2col slab: lane-block j holds x_full shifted by j -> one matmul instead of K.
    slab = jnp.concatenate([x_full[j:j + TL, :] for j in range(K)], axis=-1)

    # Single MXU matmul with f32 accumulation; store is full-lane (unmasked).
    o_ref[...] = jnp.dot(slab, w_ref[...],
                         preferred_element_type=jnp.float32).astype(o_ref.dtype)


def causal_decoder_forward(x, weight, kernel_size, *, tl=None):
    """x: (B, L, C_in) float32; weight: (C_out, C_in, K) (PyTorch Conv1d layout)."""
    B, L, C_in = x.shape
    C_out = weight.shape[0]
    K = kernel_size
    assert weight.shape == (C_out, C_in, K)
    assert K >= 2, "kernel_size >= 2 expected (module default is 16)"
    Km1 = K - 1

    # ---- time-tile selection (bounded VMEM, deep grid) -------------------------
    if tl is None:
        tl = 512                       # comfortable on v5e/v6e; well under v7x VMEM
    TL = max(8, _round_up(min(tl, _round_up(L, 8)), 8))
    NT = pl.cdiv(L, TL)
    L_pad = NT * TL

    # End-pad only when L is not a tile multiple (harmless for causal outputs).
    x_in = x if L_pad == L else jnp.pad(x, ((0, 0), (0, L_pad - L), (0, 0)))

    # ---- per-tile causal halo: the K-1 rows preceding each tile ----------------
    starts = jnp.arange(NT) * TL - Km1                        # (NT,)
    offs = starts[:, None] + jnp.arange(Km1)[None, :]         # (NT, K-1)
    valid = offs >= 0
    halo = x[:, jnp.maximum(offs, 0), :]                      # (B, NT, K-1, C_in)
    halo = jnp.where(valid[None, :, :, None], halo, jnp.zeros((), x.dtype))

    # ---- weight: (C_out, C_in, K) -> im2col (K*C_in, C_out_pad) bf16 -----------
    C_out_pad = _round_up(C_out, 128)                         # lane-dense output
    KC = K * C_in
    w2 = jnp.transpose(weight, (2, 1, 0)).reshape(KC, C_out)  # rows = j*C_in + c
    w2 = jnp.pad(w2, ((0, 0), (0, C_out_pad - C_out))).astype(jnp.bfloat16)

    # ---- VMEM budget (double-buffered blocks + slab), explicit for v7x ---------
    blk_bytes = 2 * (TL * C_in * 4 + Km1 * C_in * 4 + TL * C_out_pad * 4
                     + KC * C_out_pad * 2) + 2 * TL * (KC + C_in) * 2
    vmem_limit = int(min(48 * 2**20, max(16 * 2**20, 4 * blk_bytes)))

    out = pl.pallas_call(
        _causal_conv_kernel,
        out_shape=jax.ShapeDtypeStruct((B, L_pad, C_out_pad), x.dtype),
        grid_spec=pltpu.PrefetchScalarGridSpec(
            num_scalar_prefetch=0,
            grid=(B, NT),
            in_specs=[
                pl.BlockSpec((None, None, Km1, C_in), lambda b, t: (b, t, 0, 0)),
                pl.BlockSpec((None, TL, C_in), lambda b, t: (b, t, 0)),
                pl.BlockSpec((KC, C_out_pad), lambda b, t: (0, 0)),
            ],
            out_specs=pl.BlockSpec((None, TL, C_out_pad), lambda b, t: (b, t, 0)),
        ),
        compiler_params=pltpu.CompilerParams(
            dimension_semantics=("parallel", "parallel"),
            vmem_limit_bytes=vmem_limit),
    )(halo, x_in, w2)

    out = out[:, :L, :C_out]
    # Match PyTorch's trailing .squeeze(1): no-op unless L == 1.
    if L == 1:
        out = out[:, 0, :]
    return out
    # TODO(synk): the `state is not None` / 2-D-input decode branches of forward
    # are not implemented; only the state=None, 3-D path is covered.


def _reference_forward(x, weight, kernel_size):
    """Pure-JAX f32 reference of the PyTorch causal conv (sanity check)."""
    B, L, C_in = x.shape
    C_out, _, K = weight.shape
    x_pad = jnp.pad(x, ((0, 0), (K - 1, 0), (0, 0)))
    out = jnp.zeros((B, L, C_out), jnp.float32)
    for j in range(K):
        out = out + jnp.einsum('blc,oc->blo', x_pad[:, j:j + L, :],
                               weight[:, :, j])
    return out


if __name__ == "__main__":
    key = jax.random.PRNGKey(0)
    kx, kw, kx2 = jax.random.split(key, 3)

    # Case 1: module-consistent small shapes (batch=2, seq=8, in=4, out=6, K=16).
    B, L = 2, 8
    in_features, out_features, kernel_size = 4, 6, 16
    x = jax.random.normal(kx, (B, L, in_features), dtype=jnp.float32)
    weight = 0.1 * jax.random.normal(
        kw, (out_features, in_features, kernel_size), dtype=jnp.float32)

    out = causal_decoder_forward(x, weight, kernel_size)
    out = jax.block_until_ready(out)
    ref = _reference_forward(x, weight, kernel_size)
    assert out.shape == (B, L, out_features)
    assert jnp.allclose(out, ref, atol=5e-2, rtol=5e-2), "case 1 mismatch vs reference"

    # Case 2: exercise multi-tile path (several time tiles, end padding, halos).
    L2 = 40
    x2 = jax.random.normal(kx2, (B, L2, in_features), dtype=jnp.float32)
    out2 = causal_decoder_forward(x2, weight, kernel_size, tl=16)
    out2 = jax.block_until_ready(out2)
    ref2 = _reference_forward(x2, weight, kernel_size)
    assert out2.shape == (B, L2, out_features)
    assert jnp.allclose(out2, ref2, atol=5e-2, rtol=5e-2), "case 2 mismatch vs reference"

    print("KERNEL_OK")
</pallas_src>

<mosaic_0001>
module attributes {stable_mosaic.version = 11 : i64} {
  func.func @_causal_conv_kernel(%arg0: i32, %arg1: i32, %arg2: memref<1x1x15x4xf32, #tpu.memory_space<vmem>>, %arg3: memref<1x8x4xf32, #tpu.memory_space<vmem>>, %arg4: memref<64x128xbf16, #tpu.memory_space<vmem>>, %arg5: memref<1x8x128xf32, #tpu.memory_space<vmem>>) attributes {dimension_semantics = [#tpu.dimension_semantics<parallel>, #tpu.dimension_semantics<parallel>], iteration_bounds = array<i64: 2, 1>, scalar_prefetch = 0 : i64, scratch_operands = 0 : i64, tpu.core_type = #tpu.core_type<tc>, window_params = [{transform_indices = @transform_0, window_bounds = array<i64: 1, 1, 15, 4>}, {transform_indices = @transform_1, window_bounds = array<i64: 1, 8, 4>}, {pipeline_mode = #tpu.pipeline_mode<synchronous>, transform_indices = @transform_2, window_bounds = array<i64: 64, 128>}, {transform_indices = @transform_3, window_bounds = array<i64: 1, 8, 128>}]} {
    %c0 = arith.constant 0 : index
    %c0_0 = arith.constant 0 : index
    %c0_1 = arith.constant 0 : index
    %c0_2 = arith.constant 0 : index
    %0 = vector.load %arg2[%c0, %c0_0, %c0_1, %c0_2] : memref<1x1x15x4xf32, #tpu.memory_space<vmem>>, vector<1x1x15x4xf32>
    %1 = vector.shape_cast %0 : vector<1x1x15x4xf32> to vector<15x4xf32>
    %2 = arith.truncf %1 : vector<15x4xf32> to vector<15x4xbf16>
    %c0_3 = arith.constant 0 : index
    %c0_4 = arith.constant 0 : index
    %c0_5 = arith.constant 0 : index
    %3 = vector.load %arg3[%c0_3, %c0_4, %c0_5] : memref<1x8x4xf32, #tpu.memory_space<vmem>>, vector<1x8x4xf32>
    %4 = vector.shape_cast %3 : vector<1x8x4xf32> to vector<8x4xf32>
    %5 = arith.truncf %4 : vector<8x4xf32> to vector<8x4xbf16>
    %6 = tpu.concatenate %2, %5 in 0 : vector<15x4xbf16>, vector<8x4xbf16> -> vector<23x4xbf16>
    %7 = vector.extract_strided_slice %6 {offsets = [0, 0], sizes = [8, 4], strides = [1, 1]} : vector<23x4xbf16> to vector<8x4xbf16>
    %8 = vector.extract_strided_slice %6 {offsets = [1, 0], sizes = [8, 4], strides = [1, 1]} : vector<23x4xbf16> to vector<8x4xbf16>
    %9 = vector.extract_strided_slice %6 {offsets = [2, 0], sizes = [8, 4], strides = [1, 1]} : vector<23x4xbf16> to vector<8x4xbf16>
    %10 = vector.extract_strided_slice %6 {offsets = [3, 0], sizes = [8, 4], strides = [1, 1]} : vector<23x4xbf16> to vector<8x4xbf16>
    %11 = vector.extract_strided_slice %6 {offsets = [4, 0], sizes = [8, 4], strides = [1, 1]} : vector<23x4xbf16> to vector<8x4xbf16>
    %12 = vector.extract_strided_slice %6 {offsets = [5, 0], sizes = [8, 4], strides = [1, 1]} : vector<23x4xbf16> to vector<8x4xbf16>
    %13 = vector.extract_strided_slice %6 {offsets = [6, 0], sizes = [8, 4], strides = [1, 1]} : vector<23x4xbf16> to vector<8x4xbf16>
    %14 = vector.extract_strided_slice %6 {offsets = [7, 0], sizes = [8, 4], strides = [1, 1]} : vector<23x4xbf16> to vector<8x4xbf16>
    %15 = vector.extract_strided_slice %6 {offsets = [8, 0], sizes = [8, 4], strides = [1, 1]} : vector<23x4xbf16> to vector<8x4xbf16>
    %16 = vector.extract_strided_slice %6 {offsets = [9, 0], sizes = [8, 4], strides = [1, 1]} : vector<23x4xbf16> to vector<8x4xbf16>
    %17 = vector.extract_strided_slice %6 {offsets = [10, 0], sizes = [8, 4], strides = [1, 1]} : vector<23x4xbf16> to vector<8x4xbf16>
    %18 = vector.extract_strided_slice %6 {offsets = [11, 0], sizes = [8, 4], strides = [1, 1]} : vector<23x4xbf16> to vector<8x4xbf16>
    %19 = vector.extract_strided_slice %6 {offsets = [12, 0], sizes = [8, 4], strides = [1, 1]} : vector<23x4xbf16> to vector<8x4xbf16>
    %20 = vector.extract_strided_slice %6 {offsets = [13, 0], sizes = [8, 4], strides = [1, 1]} : vector<23x4xbf16> to vector<8x4xbf16>
    %21 = vector.extract_strided_slice %6 {offsets = [14, 0], sizes = [8, 4], strides = [1, 1]} : vector<23x4xbf16> to vector<8x4xbf16>
    %22 = vector.extract_strided_slice %6 {offsets = [15, 0], sizes = [8, 4], strides = [1, 1]} : vector<23x4xbf16> to vector<8x4xbf16>
    %23 = tpu.concatenate %7, %8, %9, %10, %11, %12, %13, %14, %15, %16, %17, %18, %19, %20, %21, %22 in 1 : vector<8x4xbf16>, vector<8x4xbf16>, vector<8x4xbf16>, vector<8x4xbf16>, vector<8x4xbf16>, vector<8x4xbf16>, vector<8x4xbf16>, vector<8x4xbf16>, vector<8x4xbf16>, vector<8x4xbf16>, vector<8x4xbf16>, vector<8x4xbf16>, vector<8x4xbf16>, vector<8x4xbf16>, vector<8x4xbf16>, vector<8x4xbf16> -> vector<8x64xbf16>
    %c0_6 = arith.constant 0 : index
    %c0_7 = arith.constant 0 : index
    %24 = vector.load %arg4[%c0_6, %c0_7] : memref<64x128xbf16, #tpu.memory_space<vmem>>, vector<64x128xbf16>
    %cst = arith.constant dense<0.000000e+00> : vector<8x128xf32>
    %25 = tpu.matmul %23, %24, %cst {dimension_numbers = #tpu.dot_dimension_numbers<[1], [0], [0], [1], [0, 0, 1, 1], [], []>} : vector<8x64xbf16>, vector<64x128xbf16>, vector<8x128xf32> -> vector<8x128xf32>
    %c0_8 = arith.constant 0 : index
    %c0_9 = arith.constant 0 : index
    %c0_10 = arith.constant 0 : index
    %26 = vector.load %arg5[%c0_8, %c0_9, %c0_10] : memref<1x8x128xf32, #tpu.memory_space<vmem>>, vector<1x8x128xf32>
    %27 = vector.shape_cast %26 : vector<1x8x128xf32> to vector<8x128xf32>
    %28 = vector.shape_cast %25 : vector<8x128xf32> to vector<1x8x128xf32>
    tpu.vector_store %arg5[%c0_8, %c0_9, %c0_10], %28 {strides = array<i32>} : memref<1x8x128xf32, #tpu.memory_space<vmem>>, vector<1x8x128xf32>,
    return
  }
  func.func @transform_0(%arg0: i32, %arg1: i32) -> (i32, i32, i32, i32) {
    %c0_i32 = arith.constant 0 : i32
    %c0_i32_0 = arith.constant 0 : i32
    %c0_i32_1 = arith.constant 0 : i32
    return %arg0, %arg1, %c0_i32, %c0_i32_0 : i32, i32, i32, i32
  }
  func.func @transform_1(%arg0: i32, %arg1: i32) -> (i32, i32, i32) {
    %c0_i32 = arith.constant 0 : i32
    %c0_i32_0 = arith.constant 0 : i32
    return %arg0, %arg1, %c0_i32 : i32, i32, i32
  }
  func.func @transform_2(%arg0: i32, %arg1: i32) -> (i32, i32) {
    %c0_i32 = arith.constant 0 : i32
    %c0_i32_0 = arith.constant 0 : i32
    %c0_i32_1 = arith.constant 0 : i32
    return %c0_i32, %c0_i32_0 : i32, i32
  }
  func.func @transform_3(%arg0: i32, %arg1: i32) -> (i32, i32, i32) {
    %c0_i32 = arith.constant 0 : i32
    %c0_i32_0 = arith.constant 0 : i32
    return %arg0, %arg1, %c0_i32 : i32, i32, i32
  }
}

</mosaic_0001>

<bundles_post_ra>
// kernel: tpu_custom_call.1
= control target key start
LH: loop header
LB: loop body
LE: loop exit
PB: predicated region body
PF: predicated region fallthrough
CT: control target
= control target key end

     0   :  { %8 = vsyncpa [#allocation3], 0  ;;  %s972_s0 = inlined_call_operand.vmem [shape: f32[2,1,15,4], index: 0, kind: input, shape index: {}]   ;;  %s973_s1 = inlined_call_operand.vmem [shape: f32[2,8,4], index: 1, kind: input, shape index: {}]   ;;  %s974_s2 = inlined_call_operand.vmem [shape: bf16[64,128], index: 2, kind: input, shape index: {}]   ;;  %s975_s3 = inlined_call_operand.hbm [shape: f32[2,8,128], index: 3, kind: output, shape index: {}]  }
   0x1   :  { %10 = vsyncpa [#allocation3 + $0x1], 0  ;;  %s794_s12 = smov 0   ;;  %s796_s13 = smov 0  }
   0x2   :  { %s798_s14 = smov 0   ;;  %s800_s15 = smov 0  }
   0x3   :  { %s802_s16 = smov 0   ;;  %s804_s17 = smov 0  }
   0x4 LB: > { %s566_s18 = sadd.s32 4294967295, %s754_s17   ;;  %s567_s19 = sadd.s32 4294967294, %s754_s17   ;;  %s754_s17 = sphi %s804_s17, %s16_s17   ;;  %s750_s16 = sphi %s802_s16, %s982_s16   ;;  %s746_s15 = sphi %s800_s15, %s981_s15   ;;  %s742_s14 = sphi %s798_s14, %s980_s14   ;;  %s738_s13 = sphi %s796_s13, %s979_s13   ;;  %s734_s12 = sphi %s794_s12, %s978_s12  }
   0x5   : > { %s28_s20 = sadd.s32 1, %s750_s16  ;;  %s114_s21 = sadd.s32 1, %s742_s14 }
   0x6   : > { %p30_p0 = scmp.ge.s32.totalorder %s28_s20, 2  ;;  %p124_p1 = scmp.ne.s32.totalorder %s742_s14, %s738_s13 }
   0x7   : > { %p125_p2 = scmp.eq.s32.totalorder %s566_s18, 1  ;;  %p130_p3 = scmp.ne.s32.totalorder %s738_s13, %s734_s12 }
   0x8   : > { %s984_s20 = smov (%p30_p0, %s28_s20), 0  ;;  %p131_p5 = scmp.eq.s32.totalorder %s567_s19, 1 }
   0x9   : > { %p834_p4 = por %p125_p2, %p124_p1  ;;  %s109_s23 = ssub.s32 %s750_s16, %s984_s20 }
   0xa   : > { %p570_p6 = scmp.ge.s32.totalorder %s754_s17, 1  ;;  %p112_p7 = scmp.eq.s32.totalorder %s109_s23, 0 }
   0xb   : > { %p841_p8 = por %p131_p5, %p130_p3  ;;  %p174_p9 = scmp.lt.s32.totalorder %s754_s17, 3 }
   0xc   : > { %s847_s25 = scalar_select %p112_p7, %s742_s14, %s114_s21  }
   0xd   : > { %p175_p10 = pnand %p570_p6, %p174_p9 }
   0xe   : > { %p209_p11 = scmp.lt.s32.totalorder (!%p175_p10), %s746_s15, 1  ;;  %s756_s8 = smov (!%p175_p10), 16  }
   0xf   : > { %178 = sbr.rel (%p175_p10) target bundleno = 388 (0x184), region = 32  ;;  %s757_s9 = smov (!%p175_p10), 8  }
  0x10   : > { %s758_s10 = smov (!%p175_p10), 24   ;;  %s759_s11 = smov (!%p175_p10), 4  }
  0x11   : > { %s760_s18 = smov (!%p175_p10), 32   ;;  %s761_s23 = smov (!%p175_p10), 20  }
  0x12   : > { %s764_s29 = smov (!%p175_p10), 28   ;;  %s765_s30 = smov (!%p175_p10), 40  }
  0x13   : > { %s766_s6 = smov (!%p175_p10), 36   ;;  %s772_s19 = smov (!%p175_p10), 60  }
  0x14   : > { %s210_s26 = scalar_select %p209_p11, %s746_s15, 1  ;;  %vm239_vm0 = vcmask 1047552   ;;  %vm240_vm1 = vsmask.f32 7424  ;;  %vm291_vm3 = vcmask 1042432   ;;  %v674_v33 = vld [vmem:[%s974_s2 + $0x18] sm:$0xff]  }
  0x15   : > { %vm241_vm2 = vmand %vm239_vm0, %vm240_vm1  ;;  %vm280_vm4 = vsmask.f32 3328  ;;  %v762_v40 = vmov 0.0   ;;  %vm309_vm5 = vcmask 1041408   ;;  %v675_v43 = vld [vmem:[%s974_s2 + $0x10] sm:$0xff]   ;;  %v676_v52 = vld [vmem:[%s974_s2 + $0x8] sm:$0xff]  }
  0x16   : > { %s584_s27 = sshll.u32 %s210_s26, 4  ;;  %s574_s28 = sshll.u32 %s210_s26, 3  ;;  %590 = vmatprep.subr.bf16.mxu0 %v762_v40  ;;  %vm297_vm6 = vsmask.f32 2304  ;;  %vm325_vm7 = vcmask 1040384   ;;  %vm767_vm8 = vmmov 0  }
  0x17   : > { %s217_s4 = scalar_lea.vmem %s972_s0, %s584_s27  ;;  %s224_s7 = scalar_lea.vmem %s973_s1, %s574_s28  ;;  %591 = vmatpush3.bf16.msra.mxu0 %v674_v33  ;;  %598 = vmatprep.mubr.msk.bf16.mxu0 %vm767_vm8, %v762_v40  ;;  %vm315_vm9 = vsmask.f32 1280  ;;  %v677_v60 = vld [vmem:[%s974_s2] sm:$0xff]   ;;  %vm331_vm10 = vsmask.f32 256  ;;  %vm338_vm11 = vcmask 31744  }
  0x18   : > { %v226_v0 = vld [vmem:[%s217_s4] sm:$0xff]  ;;  %v227_v1 = vld [vmem:[%s217_s4 + $0x8] sm:$0x7f]  ;;  %s763_s26 = smov 12   ;;  %592 = vmatprep.subr.bf16.mxu0 %v762_v40  ;;  %vm341_vm12 = vcmask 64512   ;;  %vm344_vm13 = vcmask 97280  }
  0x19   : > { %v229_v2 = vld [vmem:[%s224_s7] sm:$0xff]  ;;  %v228_v4 = vpack.c.bf16 %v227_v1, %v226_v0  ;;  %s768_s7 = smov 48   ;;  %vm347_vm14 = vcmask 130048   ;;  %vm350_vm15 = vcmask 162816   ;;  %vm353_vm0 = vcmask 195584   ;;  %s206_s21 = sand.u32 1, %s738_s13  }
  0x1a   : > { %v230_v3 = vpack.c.bf16 %v229_v2, %v229_v2  ;;  %vm356_vm1 = vcmask 228352   ;;  %vm377_vm8 = vcmask 457728   ;;  %s581_s28 = sshll.u32 %s746_s15, 7  ;;  %s460_s5 = scalar_lea.sflag [#allocation3], %s206_s21 }
  0x1b   : > { %593 = vmatpush3.bf16.msra.mxu0 %v675_v43  ;;  %s928_s4 = scalar_lea.hbm %s975_s3, %s581_s28  ;;  %s773_s15 = smov [#allocation2]  }
  0x1c   : > { %v232_v5 = vshll.u32 %v230_v3, 16  ;;  %v235_v7 = vshrl.u32 %v230_v3, 16  ;;  %594 = vmatprep.subr.bf16.mxu0 %v762_v40 }
  0x1e   : > { %v234_v6 = vrot.slane %v232_v5, 1 }
  0x1f   : > { %595 = vmatpush3.bf16.msra.mxu0 %v676_v52 }
  0x20   : > { %v857_v8 = vsel %vm241_vm2, %v228_v4, %v234_v6  ;;  %v868_v14 = vor.u32 %v235_v7, %v234_v6  ;;  %596 = vmatprep.subr.bf16.mxu0 %v762_v40  ;;  %vm359_vm2 = vcmask 261120  }
  0x21   : > { %v261_v9 = vrot.slane %v857_v8, 2  ;;  %v253_v10 = vrot.slane %v857_v8, 1  ;;  %v862_v11 = vshrl.u32 %v857_v8, 16  ;;  %v865_v12 = vshll.u32 %v857_v8, 16 }
  0x22   : > { %v269_v13 = vrot.slane %v857_v8, 3  ;;  %v277_v19 = vrot.slane %v857_v8, 4  ;;  %v879_v23 = vshll.u32 %v868_v14, 16  ;;  %v885_v28 = vshrl.u32 %v868_v14, 16 }
  0x23   : > { %262 = vrot.lane.b32.xlu1 %v261_v9, %s756_s8  ;;  %254 = vrot.lane.b32.xlu0 %v253_v10, %s757_s9  ;;  %v248_v15 = vrot.slane %v865_v12, 1  ;;  %v264_v16 = vrot.slane %v862_v11, 2  ;;  %v265_v17 = vrot.slane %v865_v12, 3  ;;  %v256_v20 = vrot.slane %v862_v11, 1 }
  0x24   : > { %v257_v21 = vrot.slane %v865_v12, 2  ;;  %v272_v22 = vrot.slane %v862_v11, 3  ;;  %v273_v25 = vrot.slane %v865_v12, 4  ;;  %v281_v26 = vrot.slane %v862_v11, 4  ;;  %597 = vmatpush3.bf16.msra.mxu0 %v677_v60 }
  0x25   : > { %v249_v18 = vor.u32 %v248_v15, %v862_v11  ;;  %v266_v24 = vor.u32 %v265_v17, %v264_v16  ;;  %v282_v27 = vrot.slane %v865_v12, 5  ;;  %v287_v30 = vrot.slane %v879_v23, 5 }
  0x26   : > { %v258_v29 = vor.u32 %v257_v21, %v256_v20  ;;  %v292_v31 = vrot.slane %v857_v8, 5  ;;  %v293_v32 = vrot.slane %v868_v14, 5  ;;  %v274_v34 = vor.u32 %v273_v25, %v272_v22 }
  0x27   : > { %270 = vrot.lane.b32.xlu1 %v269_v13, %s758_s10  ;;  %250 = vrot.lane.b32.xlu0 %v249_v18, %s759_s11  ;;  %v283_v35 = vor.u32 %v282_v27, %v281_v26  ;;  %v298_v36 = vrot.slane %v862_v11, 5  ;;  %v299_v37 = vrot.slane %v865_v12, 6  ;;  %v303_v38 = vrot.slane %v885_v28, 5  ;;  %s769_s10 = smov 44   ;;  %s770_s11 = smov 56  }
  0x28   : > { %v304_v39 = vrot.slane %v879_v23, 6  ;;  %v294_v41 = vsel %vm291_vm3, %v292_v31, %v293_v32  ;;  %v310_v42 = vrot.slane %v857_v8, 6  ;;  %v311_v46 = vrot.slane %v868_v14, 6 }
  0x29   : > { %v288_v44 = vsel %vm280_vm4, %v283_v35, %v287_v30  ;;  %v300_v45 = vor.u32 %v299_v37, %v298_v36  ;;  %v316_v47 = vrot.slane %v862_v11, 6  ;;  %v317_v49 = vrot.slane %v865_v12, 7 }
  0x2a   : > { %v305_v48 = vor.u32 %v304_v39, %v303_v38  ;;  %v319_v50 = vrot.slane %v885_v28, 6  ;;  %v320_v51 = vrot.slane %v879_v23, 7  ;;  %v312_v53 = vsel %vm309_vm5, %v310_v42, %v311_v46 }
  0x2b   : > { %278 = vrot.lane.b32.xlu1 %v277_v19, %s760_s18  ;;  %267 = vrot.lane.b32.xlu0 %v266_v24, %s761_s23  ;;  %v326_v54 = vrot.slane %v857_v8, 7  ;;  %v327_v55 = vrot.slane %v868_v14, 7  ;;  %v318_v57 = vor.u32 %v317_v49, %v316_v47  ;;  %v333_v59 = vrot.slane %v885_v28, 7  ;;  %s771_s18 = smov 52   ;;  %s571_s23 = sshll.u32 %s206_s21, 3 }
  0x2c   : > { %v306_v56 = vsel %vm297_vm6, %v300_v45, %v305_v48  ;;  %v321_v58 = vor.u32 %v320_v51, %v319_v50  ;;  %v332_v63 = vrot.slane %v862_v11, 7  ;;  %vm362_vm3 = vcmask 293888  }
  0x2d   : > { %v328_v61 = vsel %vm325_vm7, %v326_v54, %v327_v55  ;;  %v334_v0 = vor.u32 %v333_v59, %v879_v23  ;;  %vm365_vm4 = vcmask 326656   ;;  %vm368_vm5 = vcmask 359424  }
  0x2e   : > { %v322_v62 = vsel %vm315_vm9, %v318_v57, %v321_v58  ;;  %vm371_vm6 = vcmask 392192   ;;  %vm374_vm7 = vcmask 424960   ;;  %vm380_vm9 = vcmask 490496  }
  0x2f   : > { %259 = vrot.lane.b32.xlu1 %v258_v29, %s763_s26  ;;  %275 = vrot.lane.b32.xlu0 %v274_v34, %s764_s29  ;;  %v335_v1 = vsel %vm331_vm10, %v332_v63, %v334_v0  ;;  %vm415_vm10 = vcmask 523264   ;;  %s208_s26 = scalar_lea.vmem [#allocation2], %s571_s23 }
  0x30   : > { %s474_s27 = sshll.u32 %s208_s26, 4  ;;  %s923_s27 = int_to_ptr.vmem [resolvable:$true] %s474_s27 }
  0x33   : > { %295 = vrot.lane.b32.xlu1 %v294_v41, %s765_s30  ;;  %289 = vrot.lane.b32.xlu0 %v288_v44, %s766_s6  ;;  %s678_s6 = scalar_lea.vmem %s923_s27, 128 }
  0x34   : > { %p679_p12 = scmp.ne.s32.totalorder %s923_s27, %s678_s6 }
  0x36   : > { %p680_p13 = pnand %p679_p12, %p834_p4 }
  0x37   : > { %313 = vrot.lane.b32.xlu1 %v312_v53, %s768_s7  ;;  %307 = vrot.lane.b32.xlu0 %v306_v56, %s769_s10  ;;  %s682_s7 = sshll.u32 %s773_s15, 4  ;;  %s683_s7 = int_to_ptr.vmem [resolvable:$false] %s682_s7 }
  0x38   : > { %p681_p0 = pneg %p680_p13  ;;  %s684_s8 = scalar_lea.vmem %s683_s7, 256 }
  0x39   : > { %p685_p1 = scmp.lt.s32.totalorder %s923_s27, %s683_s7  ;;  %p686_p2 = scmp.lt.s32.totalorder %s684_s8, %s678_s6 }
  0x3b   : > { %329 = vrot.lane.b32.xlu1 %v328_v61, %s770_s11  ;;  %323 = vrot.lane.b32.xlu0 %v322_v62, %s771_s18  ;;  %p687_p3 = por %p686_p2, %p685_p1 }
  0x3d   : > { %p688_p5 = pnand %p687_p3, %p681_p0 }
  0x3f   : > { %336 = vrot.lane.b32.xlu0 %v335_v1, %s772_s19 }
  0x95   : > { %v263_v2 = vpop.permute.xlu1 %262  ;;  %v255_v3 = vpop.permute.xlu0 %254 }
  0x99   : > { %v271_v4 = vpop.permute.xlu1 %270  ;;  %v251_v5 = vpop.permute.xlu0 %250 }
  0x9a   : > { %v340_v7 = vsel %vm338_vm11, %v857_v8, %v251_v5 }
  0x9b   : > { %v343_v11 = vsel %vm341_vm12, %v340_v7, %v255_v3 }
  0x9d   : > { %v279_v6 = vpop.permute.xlu1 %278  ;;  %v268_v9 = vpop.permute.xlu0 %267 }
  0xa1   : > { %v260_v10 = vpop.permute.xlu1 %259  ;;  %v276_v13 = vpop.permute.xlu0 %275 }
  0xa2   : > { %v346_v12 = vsel %vm344_vm13, %v343_v11, %v260_v10 }
  0xa3   : > { %v349_v14 = vsel %vm347_vm14, %v346_v12, %v263_v2 }
  0xa4   : > { %v352_v15 = vsel %vm350_vm15, %v349_v14, %v268_v9 }
  0xa5   : > { %v355_v16 = vsel %vm353_vm0, %v352_v15, %v271_v4  ;;  %v296_v17 = vpop.permute.xlu1 %295  ;;  %v290_v19 = vpop.permute.xlu0 %289 }
  0xa6   : > { %v358_v18 = vsel %vm356_vm1, %v355_v16, %v276_v13 }
  0xa7   : > { %v361_v8 = vsel %vm359_vm2, %v358_v18, %v279_v6 }
  0xa8   : > { %v364_v20 = vsel %vm362_vm3, %v361_v8, %v290_v19 }
  0xa9   : > { %v367_v21 = vsel %vm365_vm4, %v364_v20, %v296_v17  ;;  %v314_v22 = vpop.permute.xlu1 %313  ;;  %v308_v23 = vpop.permute.xlu0 %307 }
  0xaa   : > { %v370_v24 = vsel %vm368_vm5, %v367_v21, %v308_v23 }
  0xab   : > { %v373_v25 = vsel %vm371_vm6, %v370_v24, %v314_v22 }
  0xad   : > { %v324_v26 = vpop.permute.xlu0 %323  ;;  %v330_v28 = vpop.permute.xlu1 %329 }
  0xae   : > { %v376_v27 = vsel %vm374_vm7, %v373_v25, %v324_v26 }
  0xaf   : > { %v379_v29 = vsel %vm377_vm8, %v376_v27, %v330_v28 }
  0xb1   : > { %v337_v30 = vpop.permute.xlu0 %336 }
  0xb2   : > { %v382_v31 = vsel %vm380_vm9, %v379_v29, %v337_v30 }
  0xb3   : > { %599 = vmatmul.mubr.msk.bf16.vlgmr.msra.gmra.mxu0 %vm415_vm10, %v382_v31 }
 0x173   : > { %v452_v32 = vpop.f32.mrf.mxu0 }
 0x174   : > { %458 = vst [vmem:[%s208_s26] sm:$0xff] %v452_v32 }
 0x175   : > { %v600_v33 = vpop.f32.mrf.mxu0 }
 0x176   : > { %691 = shalt.err (!%p688_p5)
}
 0x177   : > { %s692_s9 = scalar_lea.hbm %s928_s4, 128  ;;  %s696_s18 = scalar_lea.hbm %s975_s3, 256 }
 0x178   : > { %p693_p6 = scmp.ne.s32.totalorder %s928_s4, %s692_s9  ;;  %p697_p10 = scmp.lt.s32.totalorder %s928_s4, %s975_s3 }
 0x179   : > { %p698_p11 = scmp.lt.s32.totalorder %s696_s18, %s692_s9 }
 0x17a   : > { %p694_p7 = pnand %p693_p6, %p834_p4 }
 0x17b   : > { %p699_p12 = por %p698_p11, %p697_p10 }
 0x17c   : > { %p695_p9 = pneg %p694_p7 }
 0x17e   : > { %p700_p13 = pnand %p699_p12, %p695_p9 }
 0x180   : > { %703 = shalt.err (!%p700_p13)
}
 0x181   : > { %602 = dma.vmem_to_hbm [thread:$0]  (%p834_p4), %s923_s27, 128, %s928_s4, %s460_s5   ;;  %v455_v34 = vpop.f32.mrf.mxu0 }
 0x183   : > { %v601_v35 = vpop.f32.mrf.mxu0 }
 0x184 PF: > { %p608_p0 = scmp.ge.s32.totalorder %s754_s17, 2  ;;  %s486_s23 = sand.u32 1, %s734_s12  }
 0x185   : > { %s487_s26 = scalar_lea.sflag [#allocation3], %s486_s23 }
 0x186   : > { %p605_p1 = pnand %p608_p0, %p841_p8 }
 0x188   : > { %p606_p2 = pneg %p605_p1 }
 0x18a   : > { %729 = dma.done.wait (%p606_p2), %s487_s26, 128  }
 0x18b   : > { %731 = vsyncadd (%p606_p2), %s487_s26, 4294967168  ;;  %s16_s17 = sadd.s32 1, %s754_s17   ;;  %s978_s12 = smov %s738_s13 }
 0x18c   : > { %p13_p3 = scmp.ge.s32.totalorder %s16_s17, 4   ;;  %s979_s13 = smov %s742_s14 }
 0x18d   : > { %s980_s14 = smov %s847_s25  ;;  %s981_s15 = smov %s750_s16 }
 0x18e   : > { %s982_s16 = smov %s984_s20  ;;  %15 = sbr.rel (!%p13_p3) target bundleno = 4 (0x4), region = 70 }
 0x193   :  { %492 = vsyncpa [#allocation3], 1 }
 0x194   :  { %494 = vsyncpa [#allocation3 + $0x1], 1 }

</bundles_post_ra>
